<compile_context>
chip_gen: v7x
topology: tpu7x:2x2x1
jax: 0.10.0
libtpu: 0.0.40
codegen_flags: <defaults>
</compile_context>

<pallas_src>
import jax
import jax.numpy as jnp
from jax.experimental import pallas as pl
from jax.experimental.pallas import tpu as pltpu

LANE = 128
SUBLANE = 8


# ------------------------------ kernels -------------------------------------

def conv1_linear_kernel(a_ref, x_ref, w1_ref, b1_ref, wl_ref, bl_ref, h_ref):
    """Row tile of: relu(relu((A@X)@W1 + b1) @ Wl + bl)."""
    f32 = jnp.float32
    bf16 = jnp.bfloat16
    # (A_tile @ X) first: contract over N, produce the small (TM, F) intermediate.
    ax = jnp.dot(a_ref[...], x_ref[...], preferred_element_type=f32)        # (TM, Fp)
    h = jnp.dot(ax.astype(bf16), w1_ref[...], preferred_element_type=f32)   # (TM, Hp)
    h = jnp.maximum(h + b1_ref[...], 0.0)
    h = jnp.dot(h.astype(bf16), wl_ref[...], preferred_element_type=f32)    # (TM, Hp)
    h = jnp.maximum(h + bl_ref[...], 0.0)
    # TODO(synk): training-mode dropout omitted (inference: identity)
    h_ref[...] = h.astype(h_ref.dtype)                                      # bf16 out


def conv2_kernel(a_ref, h_ref, w2_ref, b2_ref, h2_ref):
    """Row tile of: (A @ h) @ W2 + b2."""
    f32 = jnp.float32
    bf16 = jnp.bfloat16
    ah = jnp.dot(a_ref[...], h_ref[...], preferred_element_type=f32)        # (TM, Hp)
    h2 = jnp.dot(ah.astype(bf16), w2_ref[...], preferred_element_type=f32)  # (TM, Hp)
    h2_ref[...] = (h2 + b2_ref[...]).astype(h2_ref.dtype)


def readout_kernel(h2_ref, smean_ref, s_ref, wr_ref, out_ref):
    """Attention readout: mean-pool -> tanh(W) -> per-node sigmoid gate -> add-pool."""
    f32 = jnp.float32
    bf16 = jnp.bfloat16
    h2 = h2_ref[...]                                                         # (Np, Hp) f32
    s = s_ref[...]                                                           # (Gp, Np)
    s_mean = smean_ref[...]                                                  # (Gp, Np)

    mean_pool = jnp.dot(s_mean, h2, preferred_element_type=f32)              # (Gp, Hp)
    tg = jnp.tanh(jnp.dot(mean_pool.astype(bf16), wr_ref[...],
                          preferred_element_type=f32))                       # (Gp, Hp)

    # transformed_global[batch] == S^T @ tg, expressed by contracting the graph axis.
    tg_per_node = jax.lax.dot_general(
        s, tg, (((0,), (0,)), ((), ())), preferred_element_type=f32)         # (Np, Hp)

    coefs = jax.nn.sigmoid(jnp.sum(h2 * tg_per_node, axis=1, keepdims=True)) # (Np, 1)
    weighted = coefs * h2                                                    # (Np, Hp)
    out_ref[...] = jnp.dot(s, weighted, preferred_element_type=f32)          # (Gp, Hp)


# ------------------------------ wrapper -------------------------------------

def _round_up(v, m):
    return ((v + m - 1) // m) * m


def _pad2(a, rows, cols):
    r, c = a.shape
    return jnp.pad(a, ((0, rows - r), (0, cols - c)))


def _pick_row_tile(np_padded):
    # TODO(synk): re-derive per chip (v6e 128 MiB vs v7x 64 MiB VMEM ceilings).
    for t in (512, 256, 128):
        if np_padded % t == 0:
            return t
    return 128


def gcn_forward(a_hat, x, params, s, s_mean):
    N, F = x.shape
    G = s.shape[0]
    H = params["w1"].shape[1]

    Np = _round_up(N, LANE)
    Fp = _round_up(F, LANE)
    Hp = _round_up(H, LANE)
    Gp = _round_up(G, SUBLANE)
    TM = _pick_row_tile(Np)

    f32, bf16 = jnp.float32, jnp.bfloat16

    # bf16 operands for the MXU (padded lanes are zero -> math unchanged).
    a_p = _pad2(a_hat, Np, Np).astype(bf16)
    x_p = _pad2(x, Np, Fp).astype(bf16)
    w1_p = _pad2(params["w1"], Fp, Hp).astype(bf16)
    wl_p = _pad2(params["wl"], Hp, Hp).astype(bf16)
    w2_p = _pad2(params["w2"], Hp, Hp).astype(bf16)
    wr_p = _pad2(params["w_read"], Hp, Hp).astype(bf16)
    # Biases / pooling matrices stay f32.
    b1_p = _pad2(params["b1"], 1, Hp).astype(f32)
    bl_p = _pad2(params["bl"], 1, Hp).astype(f32)
    b2_p = _pad2(params["b2"], 1, Hp).astype(f32)
    s_p = _pad2(s, Gp, Np).astype(f32)
    smean_p = _pad2(s_mean, Gp, Np).astype(f32)

    grid = (Np // TM,)
    cparams = pltpu.CompilerParams(
        dimension_semantics=("parallel",),
        vmem_limit_bytes=64 * 1024 * 1024,
    )

    # ---- stage 1: h = relu(relu((A@X)@W1 + b1) @ Wl + bl) ------------------
    h = pl.pallas_call(
        conv1_linear_kernel,
        out_shape=jax.ShapeDtypeStruct((Np, Hp), bf16),
        grid=grid,
        in_specs=[
            pl.BlockSpec((TM, Np), lambda i: (i, 0)),   # A row tile (streamed)
            pl.BlockSpec((Np, Fp), lambda i: (0, 0)),   # X resident
            pl.BlockSpec((Fp, Hp), lambda i: (0, 0)),
            pl.BlockSpec((1, Hp), lambda i: (0, 0)),
            pl.BlockSpec((Hp, Hp), lambda i: (0, 0)),
            pl.BlockSpec((1, Hp), lambda i: (0, 0)),
        ],
        out_specs=pl.BlockSpec((TM, Hp), lambda i: (i, 0)),
        compiler_params=cparams,
        cost_estimate=pl.CostEstimate(
            flops=2 * (Np * Np * Fp + Np * Fp * Hp + Np * Hp * Hp),
            transcendentals=0,
            bytes_accessed=2 * (a_p.size + x_p.size + w1_p.size + wl_p.size)
            + 4 * (b1_p.size + bl_p.size) + 2 * Np * Hp,
        ),
    )(a_p, x_p, w1_p, b1_p, wl_p, bl_p)

    # ---- stage 2: h2 = (A @ h) @ W2 + b2 -----------------------------------
    h2 = pl.pallas_call(
        conv2_kernel,
        out_shape=jax.ShapeDtypeStruct((Np, Hp), f32),
        grid=grid,
        in_specs=[
            pl.BlockSpec((TM, Np), lambda i: (i, 0)),   # A row tile (streamed again)
            pl.BlockSpec((Np, Hp), lambda i: (0, 0)),   # h resident in VMEM
            pl.BlockSpec((Hp, Hp), lambda i: (0, 0)),
            pl.BlockSpec((1, Hp), lambda i: (0, 0)),
        ],
        out_specs=pl.BlockSpec((TM, Hp), lambda i: (i, 0)),
        compiler_params=cparams,
        cost_estimate=pl.CostEstimate(
            flops=2 * (Np * Np * Hp + Np * Hp * Hp),
            transcendentals=0,
            bytes_accessed=2 * (a_p.size + Np * Hp + w2_p.size)
            + 4 * b2_p.size + 4 * Np * Hp,
        ),
    )(a_p, h, w2_p, b2_p)

    # ---- stage 3: attention readout (small; single block) -------------------
    out_p = pl.pallas_call(
        readout_kernel,
        out_shape=jax.ShapeDtypeStruct((Gp, Hp), f32),
        cost_estimate=pl.CostEstimate(
            flops=2 * (3 * Gp * Np * Hp + Gp * Hp * Hp) + 4 * Np * Hp,
            transcendentals=Gp * Hp + Np,
            bytes_accessed=4 * (Np * Hp + 2 * Gp * Np + Gp * Hp) + 2 * wr_p.size,
        ),
    )(h2, smean_p, s_p, wr_p)

    return out_p[:G, :H]


# --------------------------- glue / setup -----------------------------------

def xavier_uniform(key, shape):
    fan_in, fan_out = shape
    bound = (6.0 / (fan_in + fan_out)) ** 0.5
    return jax.random.uniform(key, shape, jnp.float32, -bound, bound)


def build_normalized_adjacency(edge_index, num_nodes):
    """Dense GCN normalization: D^{-1/2} (A + I) D^{-1/2}."""
    src, dst = edge_index
    adj = jnp.zeros((num_nodes, num_nodes), jnp.float32)
    adj = adj.at[src, dst].set(1.0)
    adj = adj + jnp.eye(num_nodes, dtype=jnp.float32)       # self loops
    deg = jnp.sum(adj, axis=1)
    d_inv_sqrt = jnp.where(deg > 0, 1.0 / jnp.sqrt(deg), 0.0)
    return d_inv_sqrt[:, None] * adj * d_inv_sqrt[None, :]


def build_batch_matrices(batch, num_graphs):
    """One-hot assignment S (G,N) and mean-pool matrix S * (1/count)."""
    s = (batch[None, :] == jnp.arange(num_graphs)[:, None]).astype(jnp.float32)
    counts = jnp.sum(s, axis=1, keepdims=True)
    inv_counts = jnp.where(counts > 0, 1.0 / counts, 0.0)
    return s, s * inv_counts


if __name__ == "__main__":
    # 2 graphs, 8 nodes each (N=16), node_feature_dim=8, nhid=32
    NUM_NODES = 16
    NODE_FEATURE_DIM = 8
    NHID = 32
    NUM_GRAPHS = 2

    key = jax.random.PRNGKey(0)
    k_x, k_w1, k_wl, k_bl, k_w2, k_wr = jax.random.split(key, 6)

    x = jax.random.normal(k_x, (NUM_NODES, NODE_FEATURE_DIM), jnp.float32)

    batch = jnp.concatenate([jnp.zeros(8, jnp.int32), jnp.ones(8, jnp.int32)])

    def ring_edges(offset, n):
        src = jnp.arange(n) + offset
        dst = (jnp.arange(n) + 1) % n + offset
        return jnp.stack([jnp.concatenate([src, dst]),
                          jnp.concatenate([dst, src])])

    e0 = ring_edges(0, 8)
    e1 = ring_edges(8, 8)
    edge_index = jnp.concatenate([e0, e1], axis=1)           # (2, E)

    params = {
        "w1": xavier_uniform(k_w1, (NODE_FEATURE_DIM, NHID)),
        "b1": jnp.zeros((1, NHID), jnp.float32),
        "wl": xavier_uniform(k_wl, (NHID, NHID)),
        "bl": jax.random.uniform(k_bl, (1, NHID), jnp.float32,
                                 -1.0 / NHID ** 0.5, 1.0 / NHID ** 0.5),
        "w2": xavier_uniform(k_w2, (NHID, NHID)),
        "b2": jnp.zeros((1, NHID), jnp.float32),
        "w_read": xavier_uniform(k_wr, (NHID, NHID)),
    }

    a_hat = build_normalized_adjacency(edge_index, NUM_NODES)
    s, s_mean = build_batch_matrices(batch, NUM_GRAPHS)

    out = gcn_forward(a_hat, x, params, s, s_mean)
    jax.block_until_ready(out)
    assert out.shape == (NUM_GRAPHS, NHID)
    print("KERNEL_OK")
</pallas_src>

<mosaic_0001>
module attributes {stable_mosaic.version = 11 : i64} {
  func.func @conv1_linear_kernel(%arg0: i32, %arg1: memref<128x128xbf16, #tpu.memory_space<vmem>>, %arg2: memref<128x128xbf16, #tpu.memory_space<vmem>>, %arg3: memref<128x128xbf16, #tpu.memory_space<vmem>>, %arg4: memref<1x128xf32, #tpu.memory_space<vmem>>, %arg5: memref<128x128xbf16, #tpu.memory_space<vmem>>, %arg6: memref<1x128xf32, #tpu.memory_space<vmem>>, %arg7: memref<128x128xbf16, #tpu.memory_space<vmem>>) attributes {dimension_semantics = [#tpu.dimension_semantics<parallel>], iteration_bounds = array<i64: 1>, scalar_prefetch = 0 : i64, scratch_operands = 0 : i64, tpu.core_type = #tpu.core_type<tc>, window_params = [{transform_indices = @transform_0, window_bounds = array<i64: 128, 128>}, {pipeline_mode = #tpu.pipeline_mode<synchronous>, transform_indices = @transform_1, window_bounds = array<i64: 128, 128>}, {pipeline_mode = #tpu.pipeline_mode<synchronous>, transform_indices = @transform_2, window_bounds = array<i64: 128, 128>}, {pipeline_mode = #tpu.pipeline_mode<synchronous>, transform_indices = @transform_3, window_bounds = array<i64: 1, 128>}, {pipeline_mode = #tpu.pipeline_mode<synchronous>, transform_indices = @transform_4, window_bounds = array<i64: 128, 128>}, {pipeline_mode = #tpu.pipeline_mode<synchronous>, transform_indices = @transform_5, window_bounds = array<i64: 1, 128>}, {transform_indices = @transform_6, window_bounds = array<i64: 128, 128>}]} {
    %c0 = arith.constant 0 : index
    %c0_0 = arith.constant 0 : index
    %0 = vector.load %arg1[%c0, %c0_0] : memref<128x128xbf16, #tpu.memory_space<vmem>>, vector<128x128xbf16>
    %c0_1 = arith.constant 0 : index
    %c0_2 = arith.constant 0 : index
    %1 = vector.load %arg2[%c0_1, %c0_2] : memref<128x128xbf16, #tpu.memory_space<vmem>>, vector<128x128xbf16>
    %cst = arith.constant dense<0.000000e+00> : vector<128x128xf32>
    %2 = tpu.matmul %0, %1, %cst {dimension_numbers = #tpu.dot_dimension_numbers<[1], [0], [0], [1], [0, 0, 1, 1], [], []>} : vector<128x128xbf16>, vector<128x128xbf16>, vector<128x128xf32> -> vector<128x128xf32>
    %3 = arith.truncf %2 : vector<128x128xf32> to vector<128x128xbf16>
    %c0_3 = arith.constant 0 : index
    %c0_4 = arith.constant 0 : index
    %4 = vector.load %arg3[%c0_3, %c0_4] : memref<128x128xbf16, #tpu.memory_space<vmem>>, vector<128x128xbf16>
    %cst_5 = arith.constant dense<0.000000e+00> : vector<128x128xf32>
    %5 = tpu.matmul %3, %4, %cst_5 {dimension_numbers = #tpu.dot_dimension_numbers<[1], [0], [0], [1], [0, 0, 1, 1], [], []>} : vector<128x128xbf16>, vector<128x128xbf16>, vector<128x128xf32> -> vector<128x128xf32>
    %c0_6 = arith.constant 0 : index
    %c0_7 = arith.constant 0 : index
    %6 = vector.load %arg4[%c0_6, %c0_7] : memref<1x128xf32, #tpu.memory_space<vmem>>, vector<1x128xf32>
    %7 = vector.broadcast %6 : vector<1x128xf32> to vector<128x128xf32>
    %8 = arith.addf %5, %7 : vector<128x128xf32>
    %cst_8 = arith.constant 0.000000e+00 : f32
    %9 = vector.broadcast %cst_8 : f32 to vector<128x128xf32>
    %10 = arith.maximumf %8, %9 : vector<128x128xf32>
    %11 = arith.truncf %10 : vector<128x128xf32> to vector<128x128xbf16>
    %c0_9 = arith.constant 0 : index
    %c0_10 = arith.constant 0 : index
    %12 = vector.load %arg5[%c0_9, %c0_10] : memref<128x128xbf16, #tpu.memory_space<vmem>>, vector<128x128xbf16>
    %cst_11 = arith.constant dense<0.000000e+00> : vector<128x128xf32>
    %13 = tpu.matmul %11, %12, %cst_11 {dimension_numbers = #tpu.dot_dimension_numbers<[1], [0], [0], [1], [0, 0, 1, 1], [], []>} : vector<128x128xbf16>, vector<128x128xbf16>, vector<128x128xf32> -> vector<128x128xf32>
    %c0_12 = arith.constant 0 : index
    %c0_13 = arith.constant 0 : index
    %14 = vector.load %arg6[%c0_12, %c0_13] : memref<1x128xf32, #tpu.memory_space<vmem>>, vector<1x128xf32>
    %15 = vector.broadcast %14 : vector<1x128xf32> to vector<128x128xf32>
    %16 = arith.addf %13, %15 : vector<128x128xf32>
    %cst_14 = arith.constant 0.000000e+00 : f32
    %17 = vector.broadcast %cst_14 : f32 to vector<128x128xf32>
    %18 = arith.maximumf %16, %17 : vector<128x128xf32>
    %19 = arith.truncf %18 : vector<128x128xf32> to vector<128x128xbf16>
    %c0_15 = arith.constant 0 : index
    %c0_16 = arith.constant 0 : index
    %20 = vector.load %arg7[%c0_15, %c0_16] : memref<128x128xbf16, #tpu.memory_space<vmem>>, vector<128x128xbf16>
    tpu.vector_store %arg7[%c0_15, %c0_16], %19 {strides = array<i32>} : memref<128x128xbf16, #tpu.memory_space<vmem>>, vector<128x128xbf16>,
    return
  }
  func.func @transform_0(%arg0: i32) -> (i32, i32) {
    %c0_i32 = arith.constant 0 : i32
    %c0_i32_0 = arith.constant 0 : i32
    return %arg0, %c0_i32 : i32, i32
  }
  func.func @transform_1(%arg0: i32) -> (i32, i32) {
    %c0_i32 = arith.constant 0 : i32
    %c0_i32_0 = arith.constant 0 : i32
    %c0_i32_1 = arith.constant 0 : i32
    return %c0_i32, %c0_i32_0 : i32, i32
  }
  func.func @transform_2(%arg0: i32) -> (i32, i32) {
    %c0_i32 = arith.constant 0 : i32
    %c0_i32_0 = arith.constant 0 : i32
    %c0_i32_1 = arith.constant 0 : i32
    return %c0_i32, %c0_i32_0 : i32, i32
  }
  func.func @transform_3(%arg0: i32) -> (i32, i32) {
    %c0_i32 = arith.constant 0 : i32
    %c0_i32_0 = arith.constant 0 : i32
    %c0_i32_1 = arith.constant 0 : i32
    return %c0_i32, %c0_i32_0 : i32, i32
  }
  func.func @transform_4(%arg0: i32) -> (i32, i32) {
    %c0_i32 = arith.constant 0 : i32
    %c0_i32_0 = arith.constant 0 : i32
    %c0_i32_1 = arith.constant 0 : i32
    return %c0_i32, %c0_i32_0 : i32, i32
  }
  func.func @transform_5(%arg0: i32) -> (i32, i32) {
    %c0_i32 = arith.constant 0 : i32
    %c0_i32_0 = arith.constant 0 : i32
    %c0_i32_1 = arith.constant 0 : i32
    return %c0_i32, %c0_i32_0 : i32, i32
  }
  func.func @transform_6(%arg0: i32) -> (i32, i32) {
    %c0_i32 = arith.constant 0 : i32
    %c0_i32_0 = arith.constant 0 : i32
    return %arg0, %c0_i32 : i32, i32
  }
}

</mosaic_0001>

<bundles_post_ra>
// kernel: tpu_custom_call.1
= control target key start
LH: loop header
LB: loop body
LE: loop exit
PB: predicated region body
PF: predicated region fallthrough
CT: control target
= control target key end

     0   :  { %11 = vsyncpa [#allocation3], 0  ;;  %s1448_s0 = inlined_call_operand.hbm [shape: bf16[128,128], index: 0, kind: input, shape index: {}]   ;;  %s1449_s1 = inlined_call_operand.hbm [shape: bf16[128,128], index: 1, kind: input, shape index: {}]   ;;  %s1450_s2 = inlined_call_operand.hbm [shape: bf16[128,128], index: 2, kind: input, shape index: {}]   ;;  %s1451_s3 = inlined_call_operand.hbm [shape: f32[1,128], index: 3, kind: input, shape index: {}]   ;;  %s1452_s4 = inlined_call_operand.hbm [shape: bf16[128,128], index: 4, kind: input, shape index: {}]   ;;  %s1453_s5 = inlined_call_operand.hbm [shape: f32[1,128], index: 5, kind: input, shape index: {}]   ;;  %s1454_s6 = inlined_call_operand.hbm [shape: bf16[128,128], index: 6, kind: output, shape index: {}]  }
   0x1   :  { %12 = vsyncpa [#allocation6], 0 }
   0x2   :  { %13 = vsyncpa [#allocation9], 0 }
   0x3   :  { %14 = vsyncpa [#allocation12], 0 }
   0x4   :  { %15 = vsyncpa [#allocation4], 0  ;;  %s1290_s21 = smov [#allocation5]   ;;  %s1291_s23 = smov [#allocation8]  }
   0x5   :  { %s33_s22 = sshll.u32 %s1290_s21, 4  ;;  %s58_s24 = sshll.u32 %s1291_s23, 4  ;;  %s34_s22 = int_to_ptr.vmem [resolvable:$true] %s33_s22  ;;  %s1334_s24 = int_to_ptr.vmem [resolvable:$true] %s58_s24 }
   0x6   :  { %s1126_s27 = scalar_lea.hbm %s1449_s1, 1024 }
   0x7   :  { %p1127_p0 = scmp.ne.s32.totalorder %s1449_s1, %s1126_s27  ;;  %p1130_p1 = scmp.lt.u32.totalorder %s1126_s27, %s1449_s1 }
   0x9   :  { %p1132_p2 = pnand %p1130_p1, %p1127_p0 }
   0xb   :  { %1135 = shalt.err (!%p1132_p2)
}
   0xc   :  { %s1136_s8 = scalar_lea.vmem %s34_s22, 1024  ;;  %p1141_p4 = scmp.lt.s32.totalorder %s34_s22, %s34_s22 }
   0xd   :  { %p1137_p3 = scmp.ne.s32.totalorder %s34_s22, %s1136_s8  ;;  %p1142_p5 = scmp.lt.s32.totalorder %s1136_s8, %s1136_s8 }
   0xf   :  { %p1143_p6 = por %p1142_p5, %p1141_p4 }
  0x11   :  { %p1144_p7 = pnand %p1143_p6, %p1137_p3 }
  0x13   :  { %1147 = shalt.err (!%p1144_p7)
}
  0x14   :  { %s1292_s9 = smov 64   ;;  %s1293_s10 = smov 4  }
  0x15   :  { %39 = dma.hbm_to_vmem [thread:$0]  %s1449_s1, 1024, %s34_s22, [#allocation6], %s1292_s9, %s1292_s9, %s1293_s10  }
  0x16   :  { %s1148_s15 = scalar_lea.hbm %s1451_s3, 16 }
  0x17   :  { %p1149_p8 = scmp.ne.s32.totalorder %s1451_s3, %s1148_s15  ;;  %p1152_p9 = scmp.lt.u32.totalorder %s1148_s15, %s1451_s3 }
  0x19   :  { %p1154_p10 = pnand %p1152_p9, %p1149_p8 }
  0x1b   :  { %1157 = shalt.err (!%p1154_p10)
}
  0x1c   :  { %s1158_s20 = scalar_lea.vmem %s1334_s24, 16  ;;  %s1162_s1 = scalar_lea.vmem %s1334_s24, 32 }
  0x1d   :  { %p1159_p11 = scmp.ne.s32.totalorder %s1334_s24, %s1158_s20  ;;  %p1163_p12 = scmp.lt.s32.totalorder %s1334_s24, %s1334_s24 }
  0x1e   :  { %p1164_p13 = scmp.lt.s32.totalorder %s1162_s1, %s1158_s20 }
  0x20   :  { %p1165_p0 = por %p1164_p13, %p1163_p12 }
  0x22   :  { %p1166_p1 = pnand %p1165_p0, %p1159_p11 }
  0x24   :  { %1169 = shalt.err (!%p1166_p1)
}
  0x25   :  { %61 = dma.hbm_to_vmem [thread:$0]  %s1451_s3, 16, %s1334_s24, [#allocation9]  }
  0x26   :  { %s1294_s23 = smov [#allocation2]   ;;  %s1295_s26 = smov [#allocation7]  }
  0x27   :  { %s21_s25 = sshll.u32 %s1294_s23, 4  ;;  %s45_s27 = sshll.u32 %s1295_s26, 4  ;;  %s22_s25 = int_to_ptr.vmem [resolvable:$true] %s21_s25  ;;  %s1369_s27 = int_to_ptr.vmem [resolvable:$true] %s45_s27 }
  0x28   :  { %s1170_s30 = scalar_lea.hbm %s1448_s0, 1024 }
  0x29   :  { %p1171_p2 = scmp.ne.s32.totalorder %s1448_s0, %s1170_s30  ;;  %p1174_p3 = scmp.lt.u32.totalorder %s1170_s30, %s1448_s0 }
  0x2b   :  { %p1176_p4 = pnand %p1174_p3, %p1171_p2 }
  0x2d   :  { %1179 = shalt.err (!%p1176_p4)
}
  0x2e   :  { %s1180_s3 = scalar_lea.vmem %s22_s25, 1024  ;;  %p1185_p6 = scmp.lt.s32.totalorder %s22_s25, %s22_s25 }
  0x2f   :  { %p1181_p5 = scmp.ne.s32.totalorder %s22_s25, %s1180_s3  ;;  %p1186_p7 = scmp.lt.s32.totalorder %s1180_s3, %s1180_s3 }
  0x31   :  { %p1187_p8 = por %p1186_p7, %p1185_p6 }
  0x33   :  { %p1188_p9 = pnand %p1187_p8, %p1181_p5 }
  0x35   :  { %1191 = shalt.err (!%p1188_p9)
}
  0x36   :  { %27 = dma.hbm_to_vmem [thread:$0]  %s1448_s0, 1024, %s22_s25, [#allocation3], %s1292_s9, %s1292_s9, %s1293_s10  }
  0x37   :  { %s1192_s16 = scalar_lea.hbm %s1450_s2, 1024 }
  0x38   :  { %p1193_p10 = scmp.ne.s32.totalorder %s1450_s2, %s1192_s16  ;;  %p1196_p11 = scmp.lt.u32.totalorder %s1192_s16, %s1450_s2 }
  0x3a   :  { %p1198_p12 = pnand %p1196_p11, %p1193_p10 }
  0x3c   :  { %1201 = shalt.err (!%p1198_p12)
}
  0x3d   :  { %s1202_s1 = scalar_lea.vmem %s1369_s27, 1024  ;;  %p1207_p0 = scmp.lt.s32.totalorder %s1369_s27, %s1369_s27 }
  0x3e   :  { %p1203_p13 = scmp.ne.s32.totalorder %s1369_s27, %s1202_s1  ;;  %p1208_p1 = scmp.lt.s32.totalorder %s1202_s1, %s1202_s1 }
  0x40   :  { %p1209_p2 = por %p1208_p1, %p1207_p0 }
  0x42   :  { %p1210_p3 = pnand %p1209_p2, %p1203_p13 }
  0x44   :  { %1213 = shalt.err (!%p1210_p3)
}
  0x45   :  { %51 = dma.hbm_to_vmem [thread:$0]  %s1450_s2, 1024, %s1369_s27, [#allocation6], %s1292_s9, %s1292_s9, %s1293_s10  }
  0x46   :  { %s1296_s22 = smov [#allocation10]   ;;  %s1297_s25 = smov [#allocation11]  }
  0x47   :  { %s67_s23 = sshll.u32 %s1296_s22, 4  ;;  %s80_s26 = sshll.u32 %s1297_s25, 4  ;;  %s68_s23 = int_to_ptr.vmem [resolvable:$true] %s67_s23  ;;  %s81_s26 = int_to_ptr.vmem [resolvable:$true] %s80_s26 }
  0x48   :  { %s1214_s30 = scalar_lea.hbm %s1452_s4, 1024 }
  0x49   :  { %p1215_p4 = scmp.ne.s32.totalorder %s1452_s4, %s1214_s30  ;;  %p1218_p5 = scmp.lt.u32.totalorder %s1214_s30, %s1452_s4 }
  0x4b   :  { %p1220_p6 = pnand %p1218_p5, %p1215_p4 }
  0x4d   :  { %1223 = shalt.err (!%p1220_p6)
}
  0x4e   :  { %s1224_s2 = scalar_lea.vmem %s68_s23, 1024  ;;  %p1229_p8 = scmp.lt.s32.totalorder %s68_s23, %s68_s23 }
  0x4f   :  { %p1225_p7 = scmp.ne.s32.totalorder %s68_s23, %s1224_s2  ;;  %p1230_p9 = scmp.lt.s32.totalorder %s1224_s2, %s1224_s2 }
  0x51   :  { %p1231_p10 = por %p1230_p9, %p1229_p8 }
  0x53   :  { %p1232_p11 = pnand %p1231_p10, %p1225_p7 }
  0x55   :  { %1235 = shalt.err (!%p1232_p11)
}
  0x56   :  { %73 = dma.hbm_to_vmem [thread:$0]  %s1452_s4, 1024, %s68_s23, [#allocation9], %s1292_s9, %s1292_s9, %s1293_s10  }
  0x57   :  { %s1236_s14 = scalar_lea.hbm %s1453_s5, 16 }
  0x58   :  { %p1237_p12 = scmp.ne.s32.totalorder %s1453_s5, %s1236_s14  ;;  %p1240_p13 = scmp.lt.u32.totalorder %s1236_s14, %s1453_s5 }
  0x5a   :  { %p1242_p0 = pnand %p1240_p13, %p1237_p12 }
  0x5c   :  { %1245 = shalt.err (!%p1242_p0)
}
  0x5d   :  { %s1246_s19 = scalar_lea.vmem %s81_s26, 16  ;;  %s1250_s20 = scalar_lea.vmem %s81_s26, 32 }
  0x5e   :  { %p1247_p1 = scmp.ne.s32.totalorder %s81_s26, %s1246_s19  ;;  %p1251_p2 = scmp.lt.s32.totalorder %s81_s26, %s81_s26 }
  0x5f   :  { %p1252_p3 = scmp.lt.s32.totalorder %s1250_s20, %s1246_s19 }
  0x61   :  { %p1253_p4 = por %p1252_p3, %p1251_p2 }
  0x63   :  { %p1254_p5 = pnand %p1253_p4, %p1247_p1 }
  0x65   :  { %1257 = shalt.err (!%p1254_p5)
}
  0x66   :  { %83 = dma.hbm_to_vmem [thread:$0]  %s1453_s5, 16, %s81_s26, [#allocation12]  }
  0x67   :  { %1280 = dma.done.wait [#allocation3], 1024  }
  0x68   :  { %1281 = vsyncadd [#allocation3], 4294966272 }
  0x69   :  { %1282 = dma.done.wait [#allocation6], 2048  }
  0x6a   :  { %1283 = vsyncadd [#allocation6], 4294965248 }
  0x6b   :  { %1284 = dma.done.wait [#allocation9], 1040  }
  0x6c   :  { %1285 = vsyncadd [#allocation9], 4294966256 }
  0x6d   :  { %1286 = dma.done.wait [#allocation12], 16  }
  0x6e   :  { %1287 = vsyncadd [#allocation12], 4294967280  ;;  %v1094_v0 = vld [vmem:[#allocation5] sm:$0xff]   ;;  %v1095_v1 = vld [vmem:[#allocation5 + $0x8] sm:$0xff]   ;;  %s1298_s5 = smov [#allocation13]  }
  0x6f   :  { %973 = vmatprep.subr.bf16.mxu0 %v1094_v0  ;;  %v1096_v2 = vld [vmem:[#allocation5 + $0x10] sm:$0xff]   ;;  %v1097_v3 = vld [vmem:[#allocation5 + $0x18] sm:$0xff]   ;;  %v1102_v4 = vld [vmem:[#allocation2] sm:$0xff]   ;;  %s797_s0 = sshll.u32 %s1298_s5, 4  ;;  %s798_s0 = int_to_ptr.vmem [resolvable:$true] %s797_s0 }
  0x70   :  { %974 = vmatpush3.bf16.msra.mxu0 %v1094_v0  ;;  %989 = vmatprep.mubr.bf16.mxu0 %v1102_v4  ;;  %v1098_v5 = vld [vmem:[#allocation5 + $0x20] sm:$0xff]   ;;  %v1099_v6 = vld [vmem:[#allocation5 + $0x28] sm:$0xff]   ;;  %v1100_v9 = vld [vmem:[#allocation5 + $0x30] sm:$0xff]   ;;  %s1258_s21 = scalar_lea.vmem %s798_s0, 1024  ;;  %p1263_p7 = scmp.lt.s32.totalorder %s798_s0, %s798_s0 }
  0x71   :  { %975 = vmatprep.subr.bf16.mxu0 %v1095_v1  ;;  %v1110_v7 = vld [vmem:[#allocation7] sm:$0xff]   ;;  %v1111_v8 = vld [vmem:[#allocation7 + $0x8] sm:$0xff]   ;;  %v1112_v10 = vld [vmem:[#allocation7 + $0x10] sm:$0xff]   ;;  %p1259_p6 = scmp.ne.s32.totalorder %s798_s0, %s1258_s21  ;;  %p1264_p8 = scmp.lt.s32.totalorder %s1258_s21, %s1258_s21 }
  0x72   :  { %1005 = vmatprep.subr.bf16.mxu1 %v1110_v7  ;;  %v1101_v11 = vld [vmem:[#allocation5 + $0x38] sm:$0xff]   ;;  %v1114_v13 = vld [vmem:[#allocation7 + $0x20] sm:$0xff]   ;;  %v1103_v14 = vld [vmem:[#allocation2 + $0x8] sm:$0xff]  }
  0x73   :  { %1006 = vmatpush3.bf16.msra.mxu1 %v1110_v7  ;;  %v1113_v12 = vld [vmem:[#allocation7 + $0x18] sm:$0xff]   ;;  %v1104_v15 = vld [vmem:[#allocation2 + $0x10] sm:$0xff]   ;;  %v1115_v16 = vld [vmem:[#allocation7 + $0x28] sm:$0xff]   ;;  %p1265_p9 = por %p1264_p8, %p1263_p7 }
  0x74   :  { %976 = vmatpush3.bf16.msra.mxu0 %v1095_v1  ;;  %1007 = vmatprep.subr.bf16.mxu1 %v1111_v8  ;;  %v1116_v17 = vld [vmem:[#allocation7 + $0x30] sm:$0xff]   ;;  %v1105_v18 = vld [vmem:[#allocation2 + $0x18] sm:$0xff]   ;;  %v1106_v19 = vld [vmem:[#allocation2 + $0x20] sm:$0xff]  }
  0x75   :  { %977 = vmatprep.subr.bf16.mxu0 %v1096_v2  ;;  %v1107_v20 = vld [vmem:[#allocation2 + $0x28] sm:$0xff]   ;;  %v1108_v21 = vld [vmem:[#allocation2 + $0x30] sm:$0xff]   ;;  %v1109_v22 = vld [vmem:[#allocation2 + $0x38] sm:$0xff]   ;;  %p1266_p10 = pnand %p1265_p9, %p1259_p6 }
  0x76   :  { %v1117_v23 = vld [vmem:[#allocation7 + $0x38] sm:$0xff]   ;;  %v1118_v24 = vld [vmem:[#allocation10] sm:$0xff]   ;;  %v1119_v25 = vld [vmem:[#allocation10 + $0x8] sm:$0xff]  }
  0x77   :  { %1008 = vmatpush3.bf16.msra.mxu1 %v1111_v8  ;;  %v1120_v26 = vld [vmem:[#allocation10 + $0x10] sm:$0xff]   ;;  %v1121_v27 = vld [vmem:[#allocation10 + $0x18] sm:$0xff]   ;;  %v1122_v28 = vld [vmem:[#allocation10 + $0x20] sm:$0xff]  }
  0x78   :  { %978 = vmatpush3.bf16.msra.mxu0 %v1096_v2  ;;  %1009 = vmatprep.subr.bf16.mxu1 %v1112_v10  ;;  %v1123_v29 = vld [vmem:[#allocation10 + $0x28] sm:$0xff]   ;;  %v1124_v54 = vld [vmem:[#allocation10 + $0x30] sm:$0xff]   ;;  %v1125_v55 = vld [vmem:[#allocation10 + $0x38] sm:$0xff]  }
  0x79   :  { %979 = vmatprep.subr.bf16.mxu0 %v1097_v3  ;;  %v828_v56 = vld [vmem:[#allocation8] ss:$0 sm:$0xff] }
  0x7b   :  { %1010 = vmatpush3.bf16.msra.mxu1 %v1112_v10 }
  0x7c   :  { %980 = vmatpush3.bf16.msra.mxu0 %v1097_v3  ;;  %1011 = vmatprep.subr.bf16.mxu1 %v1113_v12 }
  0x7d   :  { %981 = vmatprep.subr.bf16.mxu0 %v1098_v5 }
  0x7f   :  { %1012 = vmatpush3.bf16.msra.mxu1 %v1113_v12 }
  0x80   :  { %982 = vmatpush3.bf16.msra.mxu0 %v1098_v5  ;;  %1013 = vmatprep.subr.bf16.mxu1 %v1114_v13 }
  0x81   :  { %983 = vmatprep.subr.bf16.mxu0 %v1099_v6 }
  0x83   :  { %1014 = vmatpush3.bf16.msra.mxu1 %v1114_v13 }
  0x84   :  { %984 = vmatpush3.bf16.msra.mxu0 %v1099_v6  ;;  %1015 = vmatprep.subr.bf16.mxu1 %v1115_v16 }
  0x85   :  { %985 = vmatprep.subr.bf16.mxu0 %v1100_v9 }
  0x87   :  { %1016 = vmatpush3.bf16.msra.mxu1 %v1115_v16 }
  0x88   :  { %986 = vmatpush3.bf16.msra.mxu0 %v1100_v9  ;;  %1017 = vmatprep.subr.bf16.mxu1 %v1116_v17 }
  0x89   :  { %987 = vmatprep.subr.bf16.mxu0 %v1101_v11 }
  0x8b   :  { %1018 = vmatpush3.bf16.msra.mxu1 %v1116_v17 }
  0x8c   :  { %988 = vmatpush3.bf16.msra.mxu0 %v1101_v11  ;;  %1019 = vmatprep.subr.bf16.mxu1 %v1117_v23 }
  0x8d   :  { %1037 = vmatprep.subr.bf16.mxu0 %v1118_v24 }
  0x8f   :  { %990 = vmatmul.mubr.bf16.vlgmr.msra.gmra.mrb[0].mxu0 %v1103_v14  ;;  %1020 = vmatpush3.bf16.msra.mxu1 %v1117_v23 }
  0x90   :  { %993 = vmatprep.mubr.bf16.mxu0 %v1104_v15  ;;  %1069 = vmatprep.subr.bf16.mxu1 %v1118_v24 }
  0x91   :  { %1038 = vmatpush3.bf16.msra.mxu0 %v1118_v24 }
  0x92   :  { %1039 = vmatprep.subr.bf16.mxu0 %v1119_v25 }
  0x95   :  { %1040 = vmatpush3.bf16.msra.mxu0 %v1119_v25 }
  0x96   :  { %1041 = vmatprep.subr.bf16.mxu0 %v1120_v26 }
  0x97   :  { %994 = vmatmul.mubr.bf16.gmra.mrb[4].mxu0 %v1105_v18 }
  0x98   :  { %997 = vmatprep.mubr.bf16.mxu0 %v1106_v19 }
  0x99   :  { %1042 = vmatpush3.bf16.msra.mxu0 %v1120_v26 }
  0x9a   :  { %1043 = vmatprep.subr.bf16.mxu0 %v1121_v27 }
  0x9d   :  { %1044 = vmatpush3.bf16.msra.mxu0 %v1121_v27 }
  0x9e   :  { %1045 = vmatprep.subr.bf16.mxu0 %v1122_v28 }
  0x9f   :  { %998 = vmatmul.mubr.bf16.gmra.mrb[8].mxu0 %v1107_v20 }
  0xa0   :  { %1001 = vmatprep.mubr.bf16.mxu0 %v1108_v21 }
  0xa1   :  { %1046 = vmatpush3.bf16.msra.mxu0 %v1122_v28 }
  0xa2   :  { %1047 = vmatprep.subr.bf16.mxu0 %v1123_v29 }
  0xa5   :  { %1048 = vmatpush3.bf16.msra.mxu0 %v1123_v29 }
  0xa6   :  { %1049 = vmatprep.subr.bf16.mxu0 %v1124_v54 }
  0xa7   :  { %1002 = vmatmul.mubr.bf16.gmra.mrb[12].mxu0 %v1109_v22 }
  0xa9   :  { %1050 = vmatpush3.bf16.msra.mxu0 %v1124_v54 }
  0xaa   :  { %1051 = vmatprep.subr.bf16.mxu0 %v1125_v55 }
  0xad   :  { %1052 = vmatpush3.bf16.msra.mxu0 %v1125_v55 }
 0x162   :  { %v991_v30 = vpop.f32.mrb[0].mxu0 }
 0x163   :  { %v265_v31 = vpop.f32.mrb[1].mxu0 }
 0x164   :  { %v992_v32 = vpop.f32.mrb[2].mxu0 }
 0x165   :  { %v329_v33 = vpack.c.bf16 %v992_v32, %v991_v30  ;;  %v268_v34 = vpop.f32.mrb[3].mxu0 }
 0x166   :  { %v328_v35 = vpack.c.bf16 %v268_v34, %v265_v31 }
 0x168   :  { %1021 = vmatprep.mubr.bf16.mxu1 %v328_v35 }
 0x169   :  { %1022 = vmatmul.mubr.bf16.vlgmr.msra.gmra.mrb[0].mxu1 %v329_v33 }
 0x16a   :  { %v995_v36 = vpop.f32.mrb[4].mxu0  ;;  %1077 = vmatpush3.bf16.msra.mxu1 %v1118_v24 }
 0x16b   :  { %v281_v37 = vpop.f32.mrb[5].mxu0  ;;  %1070 = vmatprep.subr.bf16.mxu1 %v1119_v25 }
 0x16c   :  { %v996_v38 = vpop.f32.mrb[6].mxu0 }
 0x16d   :  { %v331_v39 = vpack.c.bf16 %v996_v38, %v995_v36  ;;  %v284_v40 = vpop.f32.mrb[7].mxu0 }
 0x16e   :  { %v330_v41 = vpack.c.bf16 %v284_v40, %v281_v37  ;;  %1078 = vmatpush3.bf16.msra.mxu1 %v1119_v25 }
 0x16f   :  { %1071 = vmatprep.subr.bf16.mxu1 %v1120_v26 }
 0x170   :  { %1025 = vmatprep.mubr.bf16.mxu1 %v330_v41 }
 0x171   :  { %1026 = vmatmul.mubr.bf16.gmra.mrb[4].mxu1 %v331_v39 }
 0x172   :  { %v999_v42 = vpop.f32.mrb[8].mxu0  ;;  %1079 = vmatpush3.bf16.msra.mxu1 %v1120_v26 }
 0x173   :  { %v297_v43 = vpop.f32.mrb[9].mxu0  ;;  %1072 = vmatprep.subr.bf16.mxu1 %v1121_v27 }
 0x174   :  { %v1000_v44 = vpop.f32.mrb[10].mxu0 }
 0x175   :  { %v333_v45 = vpack.c.bf16 %v1000_v44, %v999_v42  ;;  %v300_v46 = vpop.f32.mrb[11].mxu0 }
 0x176   :  { %v332_v47 = vpack.c.bf16 %v300_v46, %v297_v43  ;;  %1080 = vmatpush3.bf16.msra.mxu1 %v1121_v27 }
 0x177   :  { %1073 = vmatprep.subr.bf16.mxu1 %v1122_v28 }
 0x178   :  { %1029 = vmatprep.mubr.bf16.mxu1 %v332_v47 }
 0x179   :  { %1030 = vmatmul.mubr.bf16.gmra.mrb[8].mxu1 %v333_v45 }
 0x17a   :  { %v1003_v48 = vpop.f32.mrb[12].mxu0  ;;  %1081 = vmatpush3.bf16.msra.mxu1 %v1122_v28 }
 0x17b   :  { %v313_v49 = vpop.f32.mrb[13].mxu0  ;;  %1074 = vmatprep.subr.bf16.mxu1 %v1123_v29 }
 0x17c   :  { %v1004_v50 = vpop.f32.mrb[14].mxu0 }
 0x17d   :  { %v335_v51 = vpack.c.bf16 %v1004_v50, %v1003_v48  ;;  %v316_v52 = vpop.f32.mrb[15].mxu0 }
 0x17e   :  { %v334_v53 = vpack.c.bf16 %v316_v52, %v313_v49  ;;  %1082 = vmatpush3.bf16.msra.mxu1 %v1123_v29  ;;  %v837_v49 = vld [vmem:[#allocation11] ss:$0 sm:$0xff] }
 0x17f   :  { %1075 = vmatprep.subr.bf16.mxu1 %v1124_v54 }
 0x180   :  { %1033 = vmatprep.mubr.bf16.mxu1 %v334_v53 }
 0x181   :  { %1034 = vmatmul.mubr.bf16.gmra.mrb[12].mxu1 %v335_v51 }
 0x182   :  { %1083 = vmatpush3.bf16.msra.mxu1 %v1124_v54 }
 0x183   :  { %1076 = vmatprep.subr.bf16.mxu1 %v1125_v55 }
 0x186   :  { %1084 = vmatpush3.bf16.msra.mxu1 %v1125_v55 }
 0x23c   :  { %v1023_v57 = vpop.f32.mrb[0].mxu1 }
 0x23d   :  { %v450_v58 = vadd.f32 %v1023_v57, %v828_v56  ;;  %v441_v59 = vpop.f32.mrb[1].mxu1 }
 0x23e   :  { %v442_v60 = vadd.f32 %v828_v56, %v441_v59  ;;  %v1024_v61 = vpop.f32.mrb[2].mxu1 }
 0x23f   :  { %v453_v62 = vadd.f32 %v1024_v61, %v828_v56  ;;  %v444_v63 = vpop.f32.mrb[3].mxu1  ;;  %v506_v1 = vmax.f32 %v450_v58, 0.0 }
 0x240   :  { %v445_v0 = vadd.f32 %v828_v56, %v444_v63  ;;  %v504_v3 = vmax.f32 %v442_v60, 0.0 }
 0x241   :  { %v507_v2 = vmax.f32 %v453_v62, 0.0 }
 0x242   :  { %v505_v4 = vmax.f32 %v445_v0, 0.0 }
 0x243   :  { %v521_v5 = vpack.c.bf16 %v507_v2, %v506_v1 }
 0x244   :  { %v520_v6 = vpack.c.bf16 %v505_v4, %v504_v3  ;;  %v1027_v7 = vpop.f32.mrb[4].mxu1 }
 0x245   :  { %v466_v8 = vadd.f32 %v1027_v7, %v828_v56  ;;  %v457_v9 = vpop.f32.mrb[5].mxu1 }
 0x246   :  { %v458_v10 = vadd.f32 %v828_v56, %v457_v9  ;;  %v1028_v11 = vpop.f32.mrb[6].mxu1  ;;  %1053 = vmatprep.mubr.bf16.mxu0 %v520_v6 }
 0x247   :  { %v469_v12 = vadd.f32 %v1028_v11, %v828_v56  ;;  %v460_v13 = vpop.f32.mrb[7].mxu1  ;;  %1054 = vmatmul.mubr.bf16.vlgmr.msra.gmra.mrb[16].mxu0 %v521_v5  ;;  %v510_v15 = vmax.f32 %v466_v8, 0.0 }
 0x248   :  { %v461_v14 = vadd.f32 %v828_v56, %v460_v13  ;;  %v508_v17 = vmax.f32 %v458_v10, 0.0 }
 0x249   :  { %v511_v16 = vmax.f32 %v469_v12, 0.0 }
 0x24a   :  { %v509_v18 = vmax.f32 %v461_v14, 0.0 }
 0x24b   :  { %v523_v19 = vpack.c.bf16 %v511_v16, %v510_v15 }
 0x24c   :  { %v522_v20 = vpack.c.bf16 %v509_v18, %v508_v17  ;;  %v1031_v21 = vpop.f32.mrb[8].mxu1 }
 0x24d   :  { %v482_v22 = vadd.f32 %v1031_v21, %v828_v56  ;;  %v473_v23 = vpop.f32.mrb[9].mxu1 }
 0x24e   :  { %v474_v24 = vadd.f32 %v828_v56, %v473_v23  ;;  %v1032_v25 = vpop.f32.mrb[10].mxu1  ;;  %1057 = vmatprep.mubr.bf16.mxu0 %v522_v20 }
 0x24f   :  { %v485_v26 = vadd.f32 %v1032_v25, %v828_v56  ;;  %v476_v27 = vpop.f32.mrb[11].mxu1  ;;  %1058 = vmatmul.mubr.bf16.gmra.mrb[20].mxu0 %v523_v19  ;;  %v514_v29 = vmax.f32 %v482_v22, 0.0 }
 0x250   :  { %v477_v28 = vadd.f32 %v828_v56, %v476_v27  ;;  %v512_v31 = vmax.f32 %v474_v24, 0.0 }
 0x251   :  { %v515_v30 = vmax.f32 %v485_v26, 0.0 }
 0x252   :  { %v513_v32 = vmax.f32 %v477_v28, 0.0 }
 0x253   :  { %v525_v33 = vpack.c.bf16 %v515_v30, %v514_v29 }
 0x254   :  { %v524_v34 = vpack.c.bf16 %v513_v32, %v512_v31  ;;  %v1035_v35 = vpop.f32.mrb[12].mxu1 }
 0x255   :  { %v498_v36 = vadd.f32 %v1035_v35, %v828_v56  ;;  %v489_v37 = vpop.f32.mrb[13].mxu1 }
 0x256   :  { %v490_v38 = vadd.f32 %v828_v56, %v489_v37  ;;  %v1036_v39 = vpop.f32.mrb[14].mxu1  ;;  %1061 = vmatprep.mubr.bf16.mxu1 %v524_v34 }
 0x257   :  { %v501_v40 = vadd.f32 %v1036_v39, %v828_v56  ;;  %v492_v41 = vpop.f32.mrb[15].mxu1  ;;  %1062 = vmatmul.mubr.bf16.vlgmr.msra.gmra.mrb[16].mxu1 %v525_v33  ;;  %v518_v43 = vmax.f32 %v498_v36, 0.0 }
 0x258   :  { %v493_v42 = vadd.f32 %v828_v56, %v492_v41  ;;  %v516_v45 = vmax.f32 %v490_v38, 0.0 }
 0x259   :  { %v519_v44 = vmax.f32 %v501_v40, 0.0 }
 0x25a   :  { %v517_v46 = vmax.f32 %v493_v42, 0.0 }
 0x25b   :  { %v527_v47 = vpack.c.bf16 %v519_v44, %v518_v43 }
 0x25c   :  { %v526_v48 = vpack.c.bf16 %v517_v46, %v516_v45 }
 0x25e   :  { %1065 = vmatprep.mubr.bf16.mxu1 %v526_v48 }
 0x25f   :  { %1066 = vmatmul.mubr.bf16.gmra.mrb[20].mxu1 %v527_v47 }
 0x31a   :  { %v1055_v50 = vpop.f32.mrb[16].mxu0 }
 0x31b   :  { %v642_v51 = vadd.f32 %v1055_v50, %v837_v49  ;;  %v633_v52 = vpop.f32.mrb[17].mxu0 }
 0x31c   :  { %v634_v53 = vadd.f32 %v837_v49, %v633_v52  ;;  %v1056_v54 = vpop.f32.mrb[18].mxu0 }
 0x31d   :  { %v645_v55 = vadd.f32 %v1056_v54, %v837_v49  ;;  %v636_v57 = vpop.f32.mrb[19].mxu0  ;;  %v698_v59 = vmax.f32 %v642_v51, 0.0 }
 0x31e   :  { %v637_v58 = vadd.f32 %v837_v49, %v636_v57  ;;  %v696_v56 = vmax.f32 %v634_v53, 0.0 }
 0x31f   :  { %v699_v60 = vmax.f32 %v645_v55, 0.0 }
 0x320   :  { %v697_v61 = vmax.f32 %v637_v58, 0.0 }
 0x321   :  { %v886_v62 = vpack.c.bf16 %v699_v60, %v698_v59 }
 0x322   :  { %v881_v63 = vpack.c.bf16 %v697_v61, %v696_v56  ;;  %v1059_v0 = vpop.f32.mrb[20].mxu0 }
 0x323   :  { %918 = vst [vmem:[#allocation13 + $0x8] sm:$0xff] %v886_v62   ;;  %v658_v1 = vadd.f32 %v1059_v0, %v837_v49  ;;  %v649_v2 = vpop.f32.mrb[21].mxu0 }
 0x324   :  { %882 = vst [vmem:[#allocation13] sm:$0xff] %v881_v63   ;;  %v650_v3 = vadd.f32 %v837_v49, %v649_v2  ;;  %v1060_v4 = vpop.f32.mrb[22].mxu0 }
 0x325   :  { %v661_v5 = vadd.f32 %v1060_v4, %v837_v49  ;;  %v652_v6 = vpop.f32.mrb[23].mxu0  ;;  %v702_v8 = vmax.f32 %v658_v1, 0.0 }
 0x326   :  { %v653_v7 = vadd.f32 %v837_v49, %v652_v6  ;;  %v700_v10 = vmax.f32 %v650_v3, 0.0 }
 0x327   :  { %v703_v9 = vmax.f32 %v661_v5, 0.0 }
 0x328   :  { %v701_v11 = vmax.f32 %v653_v7, 0.0 }
 0x329   :  { %v896_v12 = vpack.c.bf16 %v703_v9, %v702_v8 }
 0x32a   :  { %v891_v13 = vpack.c.bf16 %v701_v11, %v700_v10  ;;  %v1063_v14 = vpop.f32.mrb[16].mxu1 }
 0x32b   :  { %920 = vst [vmem:[#allocation13 + $0x18] sm:$0xff] %v896_v12   ;;  %v674_v15 = vadd.f32 %v1063_v14, %v837_v49  ;;  %v665_v16 = vpop.f32.mrb[17].mxu1 }
 0x32c   :  { %919 = vst [vmem:[#allocation13 + $0x10] sm:$0xff] %v891_v13   ;;  %v666_v17 = vadd.f32 %v837_v49, %v665_v16  ;;  %v1064_v18 = vpop.f32.mrb[18].mxu1 }
 0x32d   :  { %v677_v19 = vadd.f32 %v1064_v18, %v837_v49  ;;  %v668_v20 = vpop.f32.mrb[19].mxu1  ;;  %v706_v22 = vmax.f32 %v674_v15, 0.0 }
 0x32e   :  { %v669_v21 = vadd.f32 %v837_v49, %v668_v20  ;;  %v704_v24 = vmax.f32 %v666_v17, 0.0 }
 0x32f   :  { %v707_v23 = vmax.f32 %v677_v19, 0.0 }
 0x330   :  { %v705_v25 = vmax.f32 %v669_v21, 0.0 }
 0x331   :  { %v906_v26 = vpack.c.bf16 %v707_v23, %v706_v22 }
 0x332   :  { %v901_v27 = vpack.c.bf16 %v705_v25, %v704_v24  ;;  %v1067_v28 = vpop.f32.mrb[20].mxu1 }
 0x333   :  { %922 = vst [vmem:[#allocation13 + $0x28] sm:$0xff] %v906_v26   ;;  %v690_v29 = vadd.f32 %v1067_v28, %v837_v49  ;;  %v681_v30 = vpop.f32.mrb[21].mxu1 }
 0x334   :  { %921 = vst [vmem:[#allocation13 + $0x20] sm:$0xff] %v901_v27   ;;  %v682_v31 = vadd.f32 %v837_v49, %v681_v30  ;;  %v1068_v32 = vpop.f32.mrb[22].mxu1 }
 0x335   :  { %v693_v33 = vadd.f32 %v1068_v32, %v837_v49  ;;  %v684_v34 = vpop.f32.mrb[23].mxu1  ;;  %v710_v36 = vmax.f32 %v690_v29, 0.0 }
 0x336   :  { %v685_v35 = vadd.f32 %v837_v49, %v684_v34  ;;  %v708_v38 = vmax.f32 %v682_v31, 0.0 }
 0x337   :  { %v711_v37 = vmax.f32 %v693_v33, 0.0 }
 0x338   :  { %v709_v39 = vmax.f32 %v685_v35, 0.0 }
 0x339   :  { %v916_v40 = vpack.c.bf16 %v711_v37, %v710_v36 }
 0x33a   :  { %v911_v41 = vpack.c.bf16 %v709_v39, %v708_v38 }
 0x33b   :  { %924 = vst [vmem:[#allocation13 + $0x38] sm:$0xff] %v916_v40  }
 0x33c   :  { %923 = vst [vmem:[#allocation13 + $0x30] sm:$0xff] %v911_v41  }
 0x33d   :  { %1269 = shalt.err (!%p1266_p10)
}
 0x33e   :  { %s1270_s25 = scalar_lea.hbm %s1454_s6, 1024 }
 0x33f   :  { %p1271_p11 = scmp.ne.s32.totalorder %s1454_s6, %s1270_s25  ;;  %p1274_p12 = scmp.lt.u32.totalorder %s1270_s25, %s1454_s6 }
 0x341   :  { %p1276_p13 = pnand %p1274_p12, %p1271_p11 }
 0x343   :  { %1279 = shalt.err (!%p1276_p13)
}
 0x344   :  { %803 = dma.vmem_to_hbm [thread:$0]  %s798_s0, 1024, %s1454_s6, [#allocation4], %s1292_s9, %s1292_s9, %s1293_s10  }
 0x345   :  { %1288 = dma.done.wait [#allocation4], 1024  }
 0x346   :  { %1289 = vsyncadd [#allocation4], 4294966272 }
 0x347   :  { %807 = vsyncpa [#allocation3], 1 }
 0x348   :  { %808 = vsyncpa [#allocation6], 1 }
 0x349   :  { %809 = vsyncpa [#allocation9], 1 }
 0x34a   :  { %810 = vsyncpa [#allocation12], 1 }
 0x34b   :  { %811 = vsyncpa [#allocation4], 1 }

</bundles_post_ra>
